<compile_context>
chip_gen: v6e
topology: v6e:2x2x1
jax: 0.10.0
libtpu: 0.0.40
codegen_flags: <defaults>
</compile_context>

<pallas_src>
import functools

import jax
import jax.numpy as jnp
from jax.experimental import pallas as pl
from jax.experimental.pallas import tpu as pltpu


def _round_up(x: int, m: int) -> int:
    return ((x + m - 1) // m) * m


def _pick_k_tile(k_pad: int, max_tk: int = 2048) -> int:
    """Largest multiple-of-128 tile dividing k_pad, capped for VMEM."""
    if k_pad <= max_tk:
        return k_pad
    for t in (2048, 1024, 512, 256, 128):
        if t <= max_tk and k_pad % t == 0:
            return t
    return 128


# ---------------------------------------------------------------------------
# Kernel 1a: visual embedding, multi-step K reduction (scratch accumulator)
# ---------------------------------------------------------------------------
def _embed_l2_acc_kernel(x_ref, w_ref, b_ref, o_ref, acc_ref, *, eps: float):
    k = pl.program_id(1)

    @pl.when(k == 0)
    def _init():
        acc_ref[...] = jnp.zeros_like(acc_ref)

    acc_ref[...] += jnp.dot(
        x_ref[...], w_ref[...], preferred_element_type=jnp.float32)

    @pl.when(k == pl.num_programs(1) - 1)
    def _epilogue():
        # Bias broadcast only here, hoisted out of the K reduction loop.
        acc = acc_ref[...] + b_ref[...]
        # Full (padded) output-channel row is resident in this tile, so
        # F.normalize(dim=1) fuses into the matmul epilogue.
        sumsq = jnp.sum(acc * acc, axis=-1, keepdims=True)
        denom = jnp.maximum(jnp.sqrt(sumsq), eps)
        o_ref[...] = (acc / denom).astype(o_ref.dtype)


# ---------------------------------------------------------------------------
# Kernel 1b: visual embedding, single K tile (no scratch, no branching)
# ---------------------------------------------------------------------------
def _embed_l2_single_kernel(x_ref, w_ref, b_ref, o_ref, *, eps: float):
    acc = jnp.dot(x_ref[...], w_ref[...],
                  preferred_element_type=jnp.float32) + b_ref[...]
    sumsq = jnp.sum(acc * acc, axis=-1, keepdims=True)
    denom = jnp.maximum(jnp.sqrt(sumsq), eps)
    o_ref[...] = (acc / denom).astype(o_ref.dtype)


def visual_embed_l2(x_flat, w, b, *, eps: float):
    """l2normalize(x_flat @ w + b) with a Pallas tiled matmul.

    x_flat: [N, K] float32, w: [K, C], b: [C]. Returns [N, C] float32 rows,
    already L2-normalized (norm clamped at eps like torch F.normalize).
    """
    n, k_dim = x_flat.shape
    _, c_dim = w.shape

    # Lane-dense padding: K and C to multiples of 128, rows to a sublane tile.
    k_pad = _round_up(k_dim, 128)
    c_pad = _round_up(c_dim, 128)
    tm = min(512, _round_up(n, 8))
    m_pad = _round_up(n, tm)
    tk = _pick_k_tile(k_pad)
    k_steps = k_pad // tk

    xf = x_flat.astype(jnp.float32)
    xp = jnp.pad(xf, ((0, m_pad - n), (0, k_pad - k_dim)))
    wp = jnp.pad(w.astype(jnp.float32), ((0, k_pad - k_dim), (0, c_pad - c_dim)))
    bp = jnp.pad(b.astype(jnp.float32).reshape(1, -1), ((0, 0), (0, c_pad - c_dim)))

    common_params = pltpu.CompilerParams(
        dimension_semantics=("parallel", "arbitrary"),
        vmem_limit_bytes=64 * 1024 * 1024,
    )

    if k_steps == 1:
        # Whole K fits in one tile: scratch-free single pass per row tile.
        out = pl.pallas_call(
            functools.partial(_embed_l2_single_kernel, eps=eps),
            out_shape=jax.ShapeDtypeStruct((m_pad, c_pad), jnp.float32),
            grid_spec=pltpu.PrefetchScalarGridSpec(
                num_scalar_prefetch=0,
                grid=(m_pad // tm, 1),
                in_specs=[
                    pl.BlockSpec((tm, tk), lambda i, k: (i, k)),
                    pl.BlockSpec((tk, c_pad), lambda i, k: (k, 0)),
                    pl.BlockSpec((1, c_pad), lambda i, k: (0, 0)),
                ],
                out_specs=pl.BlockSpec((tm, c_pad), lambda i, k: (i, 0)),
            ),
            compiler_params=common_params,
        )(xp, wp, bp)
    else:
        out = pl.pallas_call(
            functools.partial(_embed_l2_acc_kernel, eps=eps),
            out_shape=jax.ShapeDtypeStruct((m_pad, c_pad), jnp.float32),
            grid_spec=pltpu.PrefetchScalarGridSpec(
                num_scalar_prefetch=0,
                grid=(m_pad // tm, k_steps),
                in_specs=[
                    pl.BlockSpec((tm, tk), lambda i, k: (i, k)),
                    pl.BlockSpec((tk, c_pad), lambda i, k: (k, 0)),
                    pl.BlockSpec((1, c_pad), lambda i, k: (0, 0)),
                ],
                out_specs=pl.BlockSpec((tm, c_pad), lambda i, k: (i, 0)),
                scratch_shapes=[pltpu.VMEM((tm, c_pad), jnp.float32)],
            ),
            compiler_params=common_params,
        )(xp, wp, bp)
    return out[:n, :c_dim]


# ---------------------------------------------------------------------------
# Kernel 2: row-wise L2 normalization (for the sp_protos table)
# ---------------------------------------------------------------------------
def _l2norm_kernel(x_ref, o_ref, *, eps: float):
    x = x_ref[...].astype(jnp.float32)
    sumsq = jnp.sum(x * x, axis=-1, keepdims=True)
    denom = jnp.maximum(jnp.sqrt(sumsq), eps)
    o_ref[...] = (x / denom).astype(o_ref.dtype)


def l2_normalize_rows(x, *, eps: float):
    n, c = x.shape
    c_pad = _round_up(c, 128)
    tm = min(512, _round_up(n, 8))
    m_pad = _round_up(n, tm)
    xp = jnp.pad(x.astype(jnp.float32), ((0, m_pad - n), (0, c_pad - c)))

    out = pl.pallas_call(
        functools.partial(_l2norm_kernel, eps=eps),
        out_shape=jax.ShapeDtypeStruct((m_pad, c_pad), jnp.float32),
        grid_spec=pltpu.PrefetchScalarGridSpec(
            num_scalar_prefetch=0,
            grid=(m_pad // tm,),
            in_specs=[pl.BlockSpec((tm, c_pad), lambda i: (i, 0))],
            out_specs=pl.BlockSpec((tm, c_pad), lambda i: (i, 0)),
        ),
        compiler_params=pltpu.CompilerParams(
            dimension_semantics=("parallel",),
            vmem_limit_bytes=32 * 1024 * 1024,
        ),
    )(xp)
    return out[:n, :c]


# ---------------------------------------------------------------------------
# Forward pass (matches neko_prototyper.forward semantics)
# ---------------------------------------------------------------------------
def neko_prototyper_forward(normprotos, sp_protos, w_vis, b_vis, *,
                            rot=0, use_sp=True, capacity=512, eps=0.0009):
    """JAX/Pallas equivalent of neko_prototyper.forward (inference path)."""
    del capacity  # TODO(synk): chunked >capacity branch is equivalent to one
    #              pass for the linear stand-in engine (see header TODO).
    pimage = jnp.concatenate(normprotos, axis=0)
    if rot > 0:
        pimage = jnp.rot90(pimage, k=rot, axes=(2, 3))
    if pimage.shape[1] == 1:
        pimage = jnp.tile(pimage, (1, 3, 1, 1))
    n = pimage.shape[0]
    # Flatten exactly like PyTorch .view(N, -1) (row-major over C, H, W).
    x_flat = pimage.reshape(n, -1)
    emb = visual_embed_l2(x_flat, w_vis, b_vis, eps=eps)

    parts = []
    if use_sp:
        parts.append(l2_normalize_rows(sp_protos, eps=eps))
    parts.append(emb)
    # Row-wise normalization already applied per part == normalize-after-cat.
    return jnp.concatenate(parts, axis=0)


# ---------------------------------------------------------------------------
# Pure-JAX reference (for a sanity check)
# ---------------------------------------------------------------------------
def _reference_forward(normprotos, sp_protos, w_vis, b_vis, *, rot, use_sp,
                       eps):
    pimage = jnp.concatenate(normprotos, axis=0)
    if rot > 0:
        pimage = jnp.rot90(pimage, k=rot, axes=(2, 3))
    if pimage.shape[1] == 1:
        pimage = jnp.tile(pimage, (1, 3, 1, 1))
    x = pimage.reshape(pimage.shape[0], -1).astype(jnp.float32)
    emb = x @ w_vis + b_vis
    allp = jnp.concatenate([sp_protos, emb] if use_sp else [emb], axis=0)
    norm = jnp.sqrt(jnp.sum(allp * allp, axis=1, keepdims=True))
    return allp / jnp.maximum(norm, eps)


if __name__ == "__main__":
    key = jax.random.PRNGKey(0)
    k1, k2, k3, k4 = jax.random.split(key, 4)

    # Small shapes consistent with the module: 12 single-channel 16x16 proto
    # glyph images, output_channel=32, 3 special tokens (EOS etc.).
    num_protos, c_in, hw = 12, 1, 16
    output_channel, sp_cnt = 32, 3

    normprotos = [
        jax.random.uniform(jax.random.fold_in(k1, i), (1, c_in, hw, hw),
                           dtype=jnp.float32)
        for i in range(num_protos)
    ]
    sp_protos = jax.random.uniform(
        k2, (sp_cnt, output_channel), dtype=jnp.float32) * 2.0 - 1.0
    k_feat = 3 * hw * hw  # after the 1 -> 3 channel repeat
    w_vis = jax.random.normal(
        k3, (k_feat, output_channel), jnp.float32) / float(k_feat) ** 0.5
    b_vis = jax.random.normal(k4, (output_channel,), jnp.float32) * 0.01

    out = neko_prototyper_forward(normprotos, sp_protos, w_vis, b_vis,
                                  rot=1, use_sp=True)
    out = jax.block_until_ready(out)

    ref = _reference_forward(normprotos, sp_protos, w_vis, b_vis,
                             rot=1, use_sp=True, eps=0.0009)
    assert out.shape == (sp_cnt + num_protos, output_channel), out.shape
    max_err = float(jnp.max(jnp.abs(out - ref)))
    if max_err > 5e-3:
        raise AssertionError(f"Pallas forward mismatch: max abs err={max_err}")
    print("KERNEL_OK")
</pallas_src>

<mosaic_0001>
module attributes {stable_mosaic.version = 11 : i64} {
  func.func @_embed_l2_single_kernel(%arg0: i32, %arg1: i32, %arg2: memref<16x768xf32, #tpu.memory_space<vmem>>, %arg3: memref<768x128xf32, #tpu.memory_space<vmem>>, %arg4: memref<1x128xf32, #tpu.memory_space<vmem>>, %arg5: memref<16x128xf32, #tpu.memory_space<vmem>>) attributes {dimension_semantics = [#tpu.dimension_semantics<parallel>, #tpu.dimension_semantics<arbitrary>], iteration_bounds = array<i64: 1, 1>, scalar_prefetch = 0 : i64, scratch_operands = 0 : i64, tpu.core_type = #tpu.core_type<tc>, window_params = [{transform_indices = @transform_0, window_bounds = array<i64: 16, 768>}, {transform_indices = @transform_1, window_bounds = array<i64: 768, 128>}, {pipeline_mode = #tpu.pipeline_mode<synchronous>, transform_indices = @transform_2, window_bounds = array<i64: 1, 128>}, {transform_indices = @transform_3, window_bounds = array<i64: 16, 128>}]} {
    %c0 = arith.constant 0 : index
    %c0_0 = arith.constant 0 : index
    %0 = vector.load %arg2[%c0, %c0_0] : memref<16x768xf32, #tpu.memory_space<vmem>>, vector<16x768xf32>
    %c0_1 = arith.constant 0 : index
    %c0_2 = arith.constant 0 : index
    %1 = vector.load %arg3[%c0_1, %c0_2] : memref<768x128xf32, #tpu.memory_space<vmem>>, vector<768x128xf32>
    %cst = arith.constant dense<0.000000e+00> : vector<16x128xf32>
    %2 = tpu.matmul %0, %1, %cst {dimension_numbers = #tpu.dot_dimension_numbers<[1], [0], [0], [1], [0, 0, 1, 1], [], []>} : vector<16x768xf32>, vector<768x128xf32>, vector<16x128xf32> -> vector<16x128xf32>
    %c0_3 = arith.constant 0 : index
    %c0_4 = arith.constant 0 : index
    %3 = vector.load %arg4[%c0_3, %c0_4] : memref<1x128xf32, #tpu.memory_space<vmem>>, vector<1x128xf32>
    %4 = vector.broadcast %3 : vector<1x128xf32> to vector<16x128xf32>
    %5 = arith.addf %2, %4 : vector<16x128xf32>
    %6 = arith.mulf %5, %5 : vector<16x128xf32>
    %cst_5 = arith.constant dense<0.000000e+00> : vector<16xf32>
    %7 = vector.multi_reduction <add>, %6, %cst_5 [1] : vector<16x128xf32> to vector<16xf32>
    %8 = vector.shape_cast %7 : vector<16xf32> to vector<16x1xf32>
    %9 = math.sqrt %8 : vector<16x1xf32>
    %cst_6 = arith.constant 8.99999984E-4 : f32
    %10 = vector.broadcast %cst_6 : f32 to vector<16x1xf32>
    %11 = arith.maximumf %9, %10 : vector<16x1xf32>
    %12 = vector.broadcast %11 : vector<16x1xf32> to vector<16x128xf32>
    %13 = arith.divf %5, %12 : vector<16x128xf32>
    %c0_7 = arith.constant 0 : index
    %c0_8 = arith.constant 0 : index
    %14 = vector.load %arg5[%c0_7, %c0_8] : memref<16x128xf32, #tpu.memory_space<vmem>>, vector<16x128xf32>
    tpu.vector_store %arg5[%c0_7, %c0_8], %13 {strides = array<i32>} : memref<16x128xf32, #tpu.memory_space<vmem>>, vector<16x128xf32>,
    return
  }
  func.func @transform_0(%arg0: i32, %arg1: i32) -> (i32, i32) {
    %c0_i32 = arith.constant 0 : i32
    return %arg0, %arg1 : i32, i32
  }
  func.func @transform_1(%arg0: i32, %arg1: i32) -> (i32, i32) {
    %c0_i32 = arith.constant 0 : i32
    %c0_i32_0 = arith.constant 0 : i32
    return %arg1, %c0_i32 : i32, i32
  }
  func.func @transform_2(%arg0: i32, %arg1: i32) -> (i32, i32) {
    %c0_i32 = arith.constant 0 : i32
    %c0_i32_0 = arith.constant 0 : i32
    %c0_i32_1 = arith.constant 0 : i32
    return %c0_i32, %c0_i32_0 : i32, i32
  }
  func.func @transform_3(%arg0: i32, %arg1: i32) -> (i32, i32) {
    %c0_i32 = arith.constant 0 : i32
    %c0_i32_0 = arith.constant 0 : i32
    return %arg0, %c0_i32 : i32, i32
  }
}

</mosaic_0001>

<bundles_post_ra>
// kernel: tpu_custom_call.1
= control target key start
LH: loop header
LB: loop body
LE: loop exit
PB: predicated region body
PF: predicated region fallthrough
CT: control target
= control target key end

     0   :  { %8 = vsyncpa [#allocation3], 0  ;;  %s702_s0 = inlined_call_operand.hbm [shape: f32[16,768], index: 0, kind: input, shape index: {}]   ;;  %s703_s1 = inlined_call_operand.hbm [shape: f32[768,128], index: 1, kind: input, shape index: {}]   ;;  %s704_s2 = inlined_call_operand.vmem [shape: f32[1,128], index: 2, kind: input, shape index: {}]   ;;  %s705_s3 = inlined_call_operand.hbm [shape: f32[16,128], index: 3, kind: output, shape index: {}]  }
   0x1   :  { %9 = vsyncpa [#allocation6], 0 }
   0x2   :  { %10 = vsyncpa [#allocation4], 0  ;;  %s657_s12 = smov [#allocation2]  }
   0x3   :  { %s16_s13 = sshll.u32 %s657_s12, 4  ;;  %s17_s13 = int_to_ptr.vmem [resolvable:$true] %s16_s13 }
   0x4   :  { %s599_s14 = scalar_lea.vmem %s17_s13, 1536  ;;  %p604_p1 = scmp.lt.s32.totalorder %s17_s13, %s17_s13 }
   0x5   :  { %p600_p0 = scmp.ne.s32.totalorder %s17_s13, %s599_s14  ;;  %p605_p2 = scmp.lt.s32.totalorder %s599_s14, %s599_s14 }
   0x7   :  { %p606_p3 = por %p605_p2, %p604_p1 }
   0x9   :  { %p607_p4 = pnand %p606_p3, %p600_p0 }
   0xb   :  { %610 = shalt.err (!%p607_p4)
}
   0xc   :  { %s658_s15 = smov 768   ;;  %s659_s16 = smov 48  }
   0xd   :  { %22 = dma.hbm_to_vmem [thread:$0]  %s702_s0, 1536, %s17_s13, [#allocation3], %s658_s15, %s658_s15, %s659_s16  }
   0xe   :  { %s660_s19 = smov [#allocation5]  }
   0xf   :  { %s28_s20 = sshll.u32 %s660_s19, 4  ;;  %s29_s20 = int_to_ptr.vmem [resolvable:$true] %s28_s20 }
  0x10   :  { %s619_s21 = scalar_lea.vmem %s29_s20, 12288  ;;  %p624_p6 = scmp.lt.s32.totalorder %s29_s20, %s29_s20 }
  0x11   :  { %p620_p5 = scmp.ne.s32.totalorder %s29_s20, %s619_s21  ;;  %p625_p7 = scmp.lt.s32.totalorder %s619_s21, %s619_s21 }
  0x13   :  { %p626_p8 = por %p625_p7, %p624_p6 }
  0x15   :  { %p627_p9 = pnand %p626_p8, %p620_p5 }
  0x17   :  { %630 = shalt.err (!%p627_p9)
}
  0x18   :  { %s661_s22 = smov 128   ;;  %s662_s23 = smov 8  }
  0x19   :  { %34 = dma.hbm_to_vmem [thread:$0]  %s703_s1, 12288, %s29_s20, [#allocation6], %s661_s22, %s661_s22, %s662_s23  }
  0x1a   :  { %651 = dma.done.wait [#allocation3], 1536  }
  0x1b   :  { %652 = vsyncadd [#allocation3], 4294965760 }
  0x1c   :  { %653 = dma.done.wait [#allocation6], 12288  }
  0x1d   :  { %654 = vsyncadd [#allocation6], 4294955008  ;;  %v86_v0 = vld [vmem:[#allocation5 + $0xf8] sm:$0xff]  ;;  %v85_v4 = vld [vmem:[#allocation5 + $0xf0] sm:$0xff] }
  0x1e   :  { %v118_v1 = vld [vmem:[#allocation5 + $0x1f8] sm:$0xff]  ;;  %430 = vmatprep.subr.mxu0 %v86_v0  ;;  %v117_v5 = vld [vmem:[#allocation5 + $0x1f0] sm:$0xff]  ;;  %v84_v8 = vld [vmem:[#allocation5 + $0xe8] sm:$0xff] }
  0x1f   :  { %v70_v2 = vld [vmem:[#allocation5 + $0x78] sm:$0xff]  ;;  %468 = vmatprep.subr.mxu1 %v118_v1  ;;  %v69_v6 = vld [vmem:[#allocation5 + $0x70] sm:$0xff]  ;;  %v116_v9 = vld [vmem:[#allocation5 + $0x1e8] sm:$0xff] }
  0x20   :  { %v102_v3 = vld [vmem:[#allocation5 + $0x178] sm:$0xff]  ;;  %431 = vmatpush3.msra.mxu0 %v70_v2  ;;  %v101_v7 = vld [vmem:[#allocation5 + $0x170] sm:$0xff]  ;;  %v68_v10 = vld [vmem:[#allocation5 + $0x68] sm:$0xff] }
  0x21   :  { %469 = vmatpush3.msra.mxu1 %v102_v3  ;;  %432 = vmatprep.subr.mxu0 %v85_v4  ;;  %v100_v11 = vld [vmem:[#allocation5 + $0x168] sm:$0xff]  ;;  %v83_v12 = vld [vmem:[#allocation5 + $0xe0] sm:$0xff]  ;;  %v82_v16 = vld [vmem:[#allocation5 + $0xd8] sm:$0xff] }
  0x22   :  { %470 = vmatprep.subr.mxu1 %v117_v5  ;;  %433 = vmatpush3.msra.mxu0 %v69_v6  ;;  %v115_v13 = vld [vmem:[#allocation5 + $0x1e0] sm:$0xff]  ;;  %v114_v17 = vld [vmem:[#allocation5 + $0x1d8] sm:$0xff]  ;;  %v81_v20 = vld [vmem:[#allocation5 + $0xd0] sm:$0xff] }
  0x23   :  { %471 = vmatpush3.msra.mxu1 %v101_v7  ;;  %434 = vmatprep.subr.mxu0 %v84_v8  ;;  %v67_v14 = vld [vmem:[#allocation5 + $0x60] sm:$0xff]  ;;  %v66_v18 = vld [vmem:[#allocation5 + $0x58] sm:$0xff]  ;;  %v113_v21 = vld [vmem:[#allocation5 + $0x1d0] sm:$0xff] }
  0x24   :  { %472 = vmatprep.subr.mxu1 %v116_v9  ;;  %v99_v15 = vld [vmem:[#allocation5 + $0x160] sm:$0xff]  ;;  %435 = vmatpush3.msra.mxu0 %v68_v10  ;;  %v98_v19 = vld [vmem:[#allocation5 + $0x158] sm:$0xff]  ;;  %v65_v22 = vld [vmem:[#allocation5 + $0x50] sm:$0xff] }
  0x25   :  { %473 = vmatpush3.msra.mxu1 %v100_v11  ;;  %436 = vmatprep.subr.mxu0 %v83_v12  ;;  %v97_v23 = vld [vmem:[#allocation5 + $0x150] sm:$0xff]  ;;  %v80_v24 = vld [vmem:[#allocation5 + $0xc8] sm:$0xff]  ;;  %v79_v28 = vld [vmem:[#allocation5 + $0xc0] sm:$0xff] }
  0x26   :  { %474 = vmatprep.subr.mxu1 %v115_v13  ;;  %437 = vmatpush3.msra.mxu0 %v67_v14  ;;  %v112_v25 = vld [vmem:[#allocation5 + $0x1c8] sm:$0xff]  ;;  %v111_v29 = vld [vmem:[#allocation5 + $0x1c0] sm:$0xff]  ;;  %v78_v32 = vld [vmem:[#allocation5 + $0xb8] sm:$0xff] }
  0x27   :  { %475 = vmatpush3.msra.mxu1 %v99_v15  ;;  %438 = vmatprep.subr.mxu0 %v82_v16  ;;  %v64_v26 = vld [vmem:[#allocation5 + $0x48] sm:$0xff]  ;;  %v63_v30 = vld [vmem:[#allocation5 + $0x40] sm:$0xff]  ;;  %v110_v33 = vld [vmem:[#allocation5 + $0x1b8] sm:$0xff] }
  0x28   :  { %476 = vmatprep.subr.mxu1 %v114_v17  ;;  %439 = vmatpush3.msra.mxu0 %v66_v18  ;;  %v96_v27 = vld [vmem:[#allocation5 + $0x148] sm:$0xff]  ;;  %v95_v31 = vld [vmem:[#allocation5 + $0x140] sm:$0xff]  ;;  %v62_v34 = vld [vmem:[#allocation5 + $0x38] sm:$0xff] }
  0x29   :  { %477 = vmatpush3.msra.mxu1 %v98_v19  ;;  %440 = vmatprep.subr.mxu0 %v81_v20  ;;  %v94_v35 = vld [vmem:[#allocation5 + $0x138] sm:$0xff]  ;;  %v77_v36 = vld [vmem:[#allocation5 + $0xb0] sm:$0xff]  ;;  %v76_v40 = vld [vmem:[#allocation5 + $0xa8] sm:$0xff] }
  0x2a   :  { %478 = vmatprep.subr.mxu1 %v113_v21  ;;  %441 = vmatpush3.msra.mxu0 %v65_v22  ;;  %v109_v37 = vld [vmem:[#allocation5 + $0x1b0] sm:$0xff]  ;;  %v108_v41 = vld [vmem:[#allocation5 + $0x1a8] sm:$0xff]  ;;  %v75_v44 = vld [vmem:[#allocation5 + $0xa0] sm:$0xff] }
  0x2b   :  { %479 = vmatpush3.msra.mxu1 %v97_v23  ;;  %442 = vmatprep.subr.mxu0 %v80_v24  ;;  %v61_v38 = vld [vmem:[#allocation5 + $0x30] sm:$0xff]  ;;  %v60_v42 = vld [vmem:[#allocation5 + $0x28] sm:$0xff]  ;;  %v107_v45 = vld [vmem:[#allocation5 + $0x1a0] sm:$0xff] }
  0x2c   :  { %480 = vmatprep.subr.mxu1 %v112_v25  ;;  %443 = vmatpush3.msra.mxu0 %v64_v26  ;;  %v93_v39 = vld [vmem:[#allocation5 + $0x130] sm:$0xff]  ;;  %v92_v43 = vld [vmem:[#allocation5 + $0x128] sm:$0xff]  ;;  %v59_v46 = vld [vmem:[#allocation5 + $0x20] sm:$0xff] }
  0x2d   :  { %481 = vmatpush3.msra.mxu1 %v96_v27  ;;  %444 = vmatprep.subr.mxu0 %v79_v28  ;;  %v91_v47 = vld [vmem:[#allocation5 + $0x120] sm:$0xff]  ;;  %v74_v48 = vld [vmem:[#allocation5 + $0x98] sm:$0xff]  ;;  %v73_v52 = vld [vmem:[#allocation5 + $0x90] sm:$0xff] }
  0x2e   :  { %482 = vmatprep.subr.mxu1 %v111_v29  ;;  %445 = vmatpush3.msra.mxu0 %v63_v30  ;;  %v106_v49 = vld [vmem:[#allocation5 + $0x198] sm:$0xff]  ;;  %v105_v53 = vld [vmem:[#allocation5 + $0x190] sm:$0xff]  ;;  %v72_v56 = vld [vmem:[#allocation5 + $0x88] sm:$0xff] }
  0x2f   :  { %483 = vmatpush3.msra.mxu1 %v95_v31  ;;  %446 = vmatprep.subr.mxu0 %v78_v32  ;;  %v58_v50 = vld [vmem:[#allocation5 + $0x18] sm:$0xff]  ;;  %v57_v54 = vld [vmem:[#allocation5 + $0x10] sm:$0xff]  ;;  %v104_v57 = vld [vmem:[#allocation5 + $0x188] sm:$0xff] }
  0x30   :  { %484 = vmatprep.subr.mxu1 %v110_v33  ;;  %447 = vmatpush3.msra.mxu0 %v62_v34  ;;  %v90_v51 = vld [vmem:[#allocation5 + $0x118] sm:$0xff]  ;;  %v89_v55 = vld [vmem:[#allocation5 + $0x110] sm:$0xff]  ;;  %v56_v58 = vld [vmem:[#allocation5 + $0x8] sm:$0xff] }
  0x31   :  { %485 = vmatpush3.msra.mxu1 %v94_v35  ;;  %448 = vmatprep.subr.mxu0 %v77_v36  ;;  %v88_v59 = vld [vmem:[#allocation5 + $0x108] sm:$0xff]  ;;  %v71_v60 = vld [vmem:[#allocation5 + $0x80] sm:$0xff]  ;;  %v46_v2 = vld [vmem:[#allocation2 + $0x18] sm:$0xff] }
  0x32   :  { %486 = vmatprep.subr.mxu1 %v109_v37  ;;  %449 = vmatpush3.msra.mxu0 %v61_v38  ;;  %v103_v61 = vld [vmem:[#allocation5 + $0x180] sm:$0xff]  ;;  %v44_v63 = vld [vmem:[#allocation2 + $0x8] sm:$0xff]  ;;  %v150_v3 = vld [vmem:[#allocation5 + $0x2f8] sm:$0xff] }
  0x33   :  { %487 = vmatpush3.msra.mxu1 %v93_v39  ;;  %450 = vmatprep.subr.mxu0 %v76_v40  ;;  %v55_v62 = vld [vmem:[#allocation5] sm:$0xff]  ;;  %v45_v4 = vld [vmem:[#allocation2 + $0x10] sm:$0xff]  ;;  %v134_v5 = vld [vmem:[#allocation5 + $0x278] sm:$0xff] }
  0x34   :  { %488 = vmatprep.subr.mxu1 %v108_v41  ;;  %451 = vmatpush3.msra.mxu0 %v60_v42  ;;  %v87_v0 = vld [vmem:[#allocation5 + $0x100] sm:$0xff]  ;;  %v149_v6 = vld [vmem:[#allocation5 + $0x2f0] sm:$0xff]  ;;  %v148_v8 = vld [vmem:[#allocation5 + $0x2e8] sm:$0xff] }
  0x35   :  { %489 = vmatpush3.msra.mxu1 %v92_v43  ;;  %452 = vmatprep.subr.mxu0 %v75_v44  ;;  %v43_v1 = vld [vmem:[#allocation2] sm:$0xff]  ;;  %v133_v7 = vld [vmem:[#allocation5 + $0x270] sm:$0xff]  ;;  %v132_v9 = vld [vmem:[#allocation5 + $0x268] sm:$0xff] }
  0x36   :  { %490 = vmatprep.subr.mxu1 %v107_v45  ;;  %453 = vmatpush3.msra.mxu0 %v59_v46  ;;  %v147_v10 = vld [vmem:[#allocation5 + $0x2e0] sm:$0xff]  ;;  %v146_v12 = vld [vmem:[#allocation5 + $0x2d8] sm:$0xff]  ;;  %v145_v14 = vld [vmem:[#allocation5 + $0x2d0] sm:$0xff] }
  0x37   :  { %491 = vmatpush3.msra.mxu1 %v91_v47  ;;  %454 = vmatprep.subr.mxu0 %v74_v48  ;;  %v131_v11 = vld [vmem:[#allocation5 + $0x260] sm:$0xff]  ;;  %v130_v13 = vld [vmem:[#allocation5 + $0x258] sm:$0xff]  ;;  %v129_v15 = vld [vmem:[#allocation5 + $0x250] sm:$0xff] }
  0x38   :  { %492 = vmatprep.subr.mxu1 %v106_v49  ;;  %455 = vmatpush3.msra.mxu0 %v58_v50  ;;  %v144_v16 = vld [vmem:[#allocation5 + $0x2c8] sm:$0xff]  ;;  %v143_v18 = vld [vmem:[#allocation5 + $0x2c0] sm:$0xff]  ;;  %v142_v20 = vld [vmem:[#allocation5 + $0x2b8] sm:$0xff] }
  0x39   :  { %493 = vmatpush3.msra.mxu1 %v90_v51  ;;  %456 = vmatprep.subr.mxu0 %v73_v52  ;;  %v128_v17 = vld [vmem:[#allocation5 + $0x248] sm:$0xff]  ;;  %v127_v19 = vld [vmem:[#allocation5 + $0x240] sm:$0xff]  ;;  %v126_v21 = vld [vmem:[#allocation5 + $0x238] sm:$0xff] }
  0x3a   :  { %494 = vmatprep.subr.mxu1 %v105_v53  ;;  %457 = vmatpush3.msra.mxu0 %v57_v54  ;;  %v141_v22 = vld [vmem:[#allocation5 + $0x2b0] sm:$0xff]  ;;  %v140_v24 = vld [vmem:[#allocation5 + $0x2a8] sm:$0xff]  ;;  %v139_v26 = vld [vmem:[#allocation5 + $0x2a0] sm:$0xff] }
  0x3b   :  { %495 = vmatpush3.msra.mxu1 %v89_v55  ;;  %458 = vmatprep.subr.mxu0 %v72_v56  ;;  %v125_v23 = vld [vmem:[#allocation5 + $0x230] sm:$0xff]  ;;  %v124_v25 = vld [vmem:[#allocation5 + $0x228] sm:$0xff]  ;;  %v123_v27 = vld [vmem:[#allocation5 + $0x220] sm:$0xff] }
  0x3c   :  { %496 = vmatprep.subr.mxu1 %v104_v57  ;;  %459 = vmatpush3.msra.mxu0 %v56_v58  ;;  %v138_v28 = vld [vmem:[#allocation5 + $0x298] sm:$0xff]  ;;  %v49_v31 = vld [vmem:[#allocation2 + $0x30] sm:$0xff]  ;;  %v52_v33 = vld [vmem:[#allocation2 + $0x48] sm:$0xff] }
  0x3d   :  { %497 = vmatpush3.msra.mxu1 %v88_v59  ;;  %460 = vmatprep.subr.mxu0 %v71_v60  ;;  %v50_v29 = vld [vmem:[#allocation2 + $0x38] sm:$0xff]  ;;  %v137_v32 = vld [vmem:[#allocation5 + $0x290] sm:$0xff]  ;;  %v136_v35 = vld [vmem:[#allocation5 + $0x288] sm:$0xff] }
  0x3e   :  { %498 = vmatprep.subr.mxu1 %v103_v61  ;;  %461 = vmatpush3.msra.mxu0 %v55_v62  ;;  %v122_v30 = vld [vmem:[#allocation5 + $0x218] sm:$0xff]  ;;  %v121_v34 = vld [vmem:[#allocation5 + $0x210] sm:$0xff]  ;;  %v51_v36 = vld [vmem:[#allocation2 + $0x40] sm:$0xff] }
  0x3f   :  { %222 = vmatprep.mubr.f32.mxu0 %v44_v63  ;;  %499 = vmatpush3.msra.mxu1 %v87_v0  ;;  %v120_v37 = vld [vmem:[#allocation5 + $0x208] sm:$0xff]  ;;  %v135_v38 = vld [vmem:[#allocation5 + $0x280] sm:$0xff]  ;;  %v54_v41 = vld [vmem:[#allocation2 + $0x58] sm:$0xff] }
  0x40   :  { %223 = vmatmul.mubr.f32.vlgmr.msra.gmra.mxu0 %v43_v1  ;;  %297 = vmatprep.mubr.f32.mxu1 %v46_v2  ;;  %v119_v39 = vld [vmem:[#allocation5 + $0x200] sm:$0xff]  ;;  %v48_v40 = vld [vmem:[#allocation2 + $0x28] sm:$0xff]  ;;  %v53_v43 = vld [vmem:[#allocation2 + $0x50] sm:$0xff] }
  0x41   :  { %506 = vmatprep.subr.mxu0 %v150_v3  ;;  %544 = vmatprep.subr.mxu1 %v150_v3  ;;  %v47_v42 = vld [vmem:[#allocation2 + $0x20] sm:$0xff] }
  0x42   :  { %298 = vmatmul.mubr.f32.vlgmr.msra.gmra.mxu1 %v45_v4  ;;  %507 = vmatpush3.msra.mxu0 %v134_v5  ;;  %v429_v52 = vld [vmem:[%s704_s2] ss:$0 sm:$0xff]  ;;  %s663_s2 = smov [#allocation7]  }
  0x43   :  { %560 = vmatpush3.msra.mxu1 %v134_v5  ;;  %508 = vmatprep.subr.mxu0 %v149_v6  ;;  %s416_s26 = sshll.u32 %s663_s2, 4  ;;  %s417_s26 = int_to_ptr.vmem [resolvable:$true] %s416_s26 }
  0x44   :  { %545 = vmatprep.subr.mxu1 %v149_v6  ;;  %509 = vmatpush3.msra.mxu0 %v133_v7  ;;  %s631_s27 = scalar_lea.vmem %s417_s26, 256  ;;  %p636_p11 = scmp.lt.s32.totalorder %s417_s26, %s417_s26 }
  0x45   :  { %561 = vmatpush3.msra.mxu1 %v133_v7  ;;  %510 = vmatprep.subr.mxu0 %v148_v8  ;;  %p632_p10 = scmp.ne.s32.totalorder %s417_s26, %s631_s27  ;;  %p637_p12 = scmp.lt.s32.totalorder %s631_s27, %s631_s27 }
  0x46   :  { %546 = vmatprep.subr.mxu1 %v148_v8  ;;  %511 = vmatpush3.msra.mxu0 %v132_v9 }
  0x47   :  { %562 = vmatpush3.msra.mxu1 %v132_v9  ;;  %512 = vmatprep.subr.mxu0 %v147_v10  ;;  %p638_p13 = por %p637_p12, %p636_p11 }
  0x48   :  { %547 = vmatprep.subr.mxu1 %v147_v10  ;;  %513 = vmatpush3.msra.mxu0 %v131_v11 }
  0x49   :  { %563 = vmatpush3.msra.mxu1 %v131_v11  ;;  %514 = vmatprep.subr.mxu0 %v146_v12  ;;  %p639_p0 = pnand %p638_p13, %p632_p10 }
  0x4a   :  { %548 = vmatprep.subr.mxu1 %v146_v12  ;;  %515 = vmatpush3.msra.mxu0 %v130_v13 }
  0x4b   :  { %564 = vmatpush3.msra.mxu1 %v130_v13  ;;  %516 = vmatprep.subr.mxu0 %v145_v14 }
  0x4c   :  { %549 = vmatprep.subr.mxu1 %v145_v14  ;;  %517 = vmatpush3.msra.mxu0 %v129_v15 }
  0x4d   :  { %565 = vmatpush3.msra.mxu1 %v129_v15  ;;  %518 = vmatprep.subr.mxu0 %v144_v16 }
  0x4e   :  { %550 = vmatprep.subr.mxu1 %v144_v16  ;;  %519 = vmatpush3.msra.mxu0 %v128_v17 }
  0x4f   :  { %566 = vmatpush3.msra.mxu1 %v128_v17  ;;  %520 = vmatprep.subr.mxu0 %v143_v18 }
  0x50   :  { %551 = vmatprep.subr.mxu1 %v143_v18  ;;  %521 = vmatpush3.msra.mxu0 %v127_v19 }
  0x51   :  { %567 = vmatpush3.msra.mxu1 %v127_v19  ;;  %522 = vmatprep.subr.mxu0 %v142_v20 }
  0x52   :  { %552 = vmatprep.subr.mxu1 %v142_v20  ;;  %523 = vmatpush3.msra.mxu0 %v126_v21 }
  0x53   :  { %568 = vmatpush3.msra.mxu1 %v126_v21  ;;  %524 = vmatprep.subr.mxu0 %v141_v22 }
  0x54   :  { %553 = vmatprep.subr.mxu1 %v141_v22  ;;  %525 = vmatpush3.msra.mxu0 %v125_v23 }
  0x55   :  { %569 = vmatpush3.msra.mxu1 %v125_v23  ;;  %526 = vmatprep.subr.mxu0 %v140_v24 }
  0x56   :  { %554 = vmatprep.subr.mxu1 %v140_v24  ;;  %527 = vmatpush3.msra.mxu0 %v124_v25 }
  0x57   :  { %570 = vmatpush3.msra.mxu1 %v124_v25  ;;  %528 = vmatprep.subr.mxu0 %v139_v26 }
  0x58   :  { %555 = vmatprep.subr.mxu1 %v139_v26  ;;  %529 = vmatpush3.msra.mxu0 %v123_v27 }
  0x59   :  { %571 = vmatpush3.msra.mxu1 %v123_v27  ;;  %530 = vmatprep.subr.mxu0 %v138_v28 }
  0x5a   :  { %556 = vmatprep.subr.mxu1 %v138_v28  ;;  %227 = vmatprep.mubr.f32.mxu0 %v50_v29 }
  0x5b   :  { %531 = vmatpush3.msra.mxu0 %v122_v30  ;;  %572 = vmatpush3.msra.mxu1 %v122_v30 }
  0x5c   :  { %228 = vmatmul.mubr.f32.gmra.mxu0 %v49_v31  ;;  %532 = vmatprep.subr.mxu0 %v137_v32 }
  0x5d   :  { %557 = vmatprep.subr.mxu1 %v137_v32  ;;  %302 = vmatprep.mubr.f32.mxu1 %v52_v33 }
  0x5e   :  { %533 = vmatpush3.msra.mxu0 %v121_v34  ;;  %573 = vmatpush3.msra.mxu1 %v121_v34 }
  0x5f   :  { %534 = vmatprep.subr.mxu0 %v136_v35  ;;  %303 = vmatmul.mubr.f32.gmra.mxu1 %v51_v36 }
  0x60   :  { %558 = vmatprep.subr.mxu1 %v136_v35  ;;  %535 = vmatpush3.msra.mxu0 %v120_v37 }
  0x61   :  { %574 = vmatpush3.msra.mxu1 %v120_v37  ;;  %536 = vmatprep.subr.mxu0 %v135_v38 }
  0x62   :  { %559 = vmatprep.subr.mxu1 %v135_v38  ;;  %537 = vmatpush3.msra.mxu0 %v119_v39 }
  0x63   :  { %575 = vmatpush3.msra.mxu1 %v119_v39  ;;  %372 = vmatprep.mubr.f32.mxu0 %v48_v40 }
  0x64   :  { %377 = vmatprep.mubr.f32.mxu1 %v54_v41  ;;  %373 = vmatmul.mubr.f32.vlgmr.msra.gmra.mxu0 %v47_v42 }
  0x65   :  { %378 = vmatmul.mubr.f32.vlgmr.msra.gmra.mxu1 %v53_v43 }
 0x100   :  { %v462_v44 = vpop.f32.mrf.mxu0 }
 0x102   :  { %v463_v45 = vpop.f32.mrf.mxu0  ;;  %v500_v46 = vpop.f32.mrf.mxu1 }
 0x103   :  { %v464_v50 = vadd.f32 %v463_v45, %v462_v44 }
 0x104   :  { %v501_v48 = vpop.f32.mrf.mxu1 }
 0x105   :  { %v225_v55 = vadd.f32 %v464_v50, %v429_v52  ;;  %v502_v56 = vadd.f32 %v501_v48, %v500_v46 }
 0x107   :  { %v300_v63 = vadd.f32 %v502_v56, %v225_v55 }
 0x11c   :  { %v465_v47 = vpop.f32.mrf.mxu0 }
 0x11e   :  { %v466_v49 = vpop.f32.mrf.mxu0 }
 0x11f   :  { %v503_v51 = vpop.f32.mrf.mxu1  ;;  %v467_v53 = vadd.f32 %v466_v49, %v465_v47 }
 0x121   :  { %v504_v54 = vpop.f32.mrf.mxu1  ;;  %v230_v59 = vadd.f32 %v467_v53, %v429_v52 }
 0x122   :  { %v505_v60 = vadd.f32 %v504_v54, %v503_v51 }
 0x124   :  { %v538_v57 = vpop.f32.mrf.mxu0  ;;  %v305_v2 = vadd.f32 %v505_v60, %v230_v59 }
 0x125   :  { %v541_v58 = vpop.f32.mrf.mxu1 }
 0x126   :  { %v539_v61 = vpop.f32.mrf.mxu0 }
 0x127   :  { %v542_v62 = vpop.f32.mrf.mxu1  ;;  %v540_v0 = vadd.f32 %v539_v61, %v538_v57 }
 0x128   :  { %v543_v1 = vadd.f32 %v542_v62, %v541_v58 }
 0x129   :  { %v375_v3 = vadd.f32 %v540_v0, %v300_v63 }
 0x12a   :  { %v380_v4 = vadd.f32 %v543_v1, %v305_v2 }
 0x12b   :  { %v383_v5 = vmul.f32 %v375_v3, %v375_v3 }
 0x12c   :  { %v384_v6 = vmul.f32 %v380_v4, %v380_v4 }
 0x12d   :  { %385 = vadd.xlane.f32.xlu0 %v383_v5 }
 0x131   :  { %387 = vadd.xlane.f32.xlu0 %v384_v6 }
 0x1b6   :  { %v386_v7 = vpop.xlane.xlu0 %385 }
 0x1b7   :  { %583 = vrsqrt.f32 %v386_v7  ;;  %vm391_vm0 = vcmp.eq.f32.partialorder %v386_v7, inf  ;;  %v394_v11 = vand.u32 2147483648, %v386_v7  ;;  %vm393_vm1 = vcmp.eq.f32.partialorder %v386_v7, 0.0 }
 0x1ba   :  { %v388_v8 = vpop.xlane.xlu0 %387 }
 0x1bb   :  { %585 = vrsqrt.f32 %v388_v8  ;;  %vm398_vm2 = vcmp.eq.f32.partialorder %v388_v8, inf  ;;  %v401_v17 = vand.u32 2147483648, %v388_v8  ;;  %vm400_vm3 = vcmp.eq.f32.partialorder %v388_v8, 0.0 }
 0x1c4   :  { %v584_v9 = vpop.eup %583 }
 0x1c5   :  { %v390_v10 = vmul.f32 %v584_v9, %v386_v7 }
 0x1c7   :  { %v392_v12 = vsel %vm391_vm0, %v386_v7, %v390_v10 }
 0x1c8   :  { %v586_v13 = vpop.eup %585  ;;  %v395_v14 = vsel %vm393_vm1, %v394_v11, %v392_v12 }
 0x1c9   :  { %v403_v15 = vmax.f32 %v395_v14, 0.0009  ;;  %v397_v16 = vmul.f32 %v586_v13, %v388_v8 }
 0x1cb   :  { %587 = vrcp.f32 %v403_v15  ;;  %v399_v18 = vsel %vm398_vm2, %v388_v8, %v397_v16 }
 0x1cc   :  { %v402_v19 = vsel %vm400_vm3, %v401_v17, %v399_v18 }
 0x1cd   :  { %v404_v20 = vmax.f32 %v402_v19, 0.0009 }
 0x1cf   :  { %589 = vrcp.f32 %v404_v20 }
 0x1d8   :  { %v588_v21 = vpop.eup %587 }
 0x1d9   :  { %v406_v22 = vmul.f32 %v588_v21, %v375_v3 }
 0x1db   :  { %409 = vst [vmem:[#allocation7] sm:$0xff] %v406_v22 }
 0x1dc   :  { %v590_v23 = vpop.eup %589 }
 0x1dd   :  { %v408_v24 = vmul.f32 %v590_v23, %v380_v4 }
 0x1df   :  { %410 = vst [vmem:[#allocation7 + $0x8] sm:$0xff] %v408_v24 }
 0x1e0   :  { %642 = shalt.err (!%p639_p0)
}
 0x1e1   :  { %422 = dma.vmem_to_hbm [thread:$0]  %s417_s26, 256, %s705_s3, [#allocation4], %s661_s22, %s661_s22, %s662_s23  }
 0x1e2   :  { %655 = dma.done.wait [#allocation4], 256  }
 0x1e3   :  { %656 = vsyncadd [#allocation4], 4294967040 }
 0x1e4   :  { %426 = vsyncpa [#allocation3], 1 }
 0x1e5   :  { %427 = vsyncpa [#allocation6], 1 }
 0x1e6   :  { %428 = vsyncpa [#allocation4], 1 }

</bundles_post_ra>
